<compile_context>
chip_gen: v7x
topology: tpu7x:2x2x1
jax: 0.10.0
libtpu: 0.0.40
codegen_flags: <defaults>
</compile_context>

<pallas_src>
import jax
import jax.numpy as jnp
from jax import lax
from jax.experimental import pallas as pl
from jax.experimental.pallas import tpu as pltpu


# ---------------------------------------------------------------------------
# Pallas kernel: complex contraction over in_channels.
#   xr/xi : (Cin, B_blk,  M_blk)   real / imag of x_ft mode slab
#   wr/wi : (Cin, Cout_blk, M_blk) real / imag of fused weights
#   or/oi : (B_blk, Cout_blk, M_blk) real / imag of result
#   out[b, o, m] = sum_i x[i, b, m] * w[i, o, m]   (complex MAC over Cin)
# ---------------------------------------------------------------------------
def _spectral_mul_kernel(xr_ref, xi_ref, wr_ref, wi_ref, or_ref, oi_ref):
    cin = xr_ref.shape[0]
    acc_shape = or_ref.shape

    def body(i, carry):
        acc_r, acc_i = carry
        xr_i = xr_ref[i][:, None, :]   # (B_blk, 1, M_blk)
        xi_i = xi_ref[i][:, None, :]
        wr_i = wr_ref[i][None, :, :]   # (1, Cout_blk, M_blk)
        wi_i = wi_ref[i][None, :, :]
        # (a + ib)(c + id) = (ac - bd) + i(ad + bc)
        acc_r = acc_r + (xr_i * wr_i - xi_i * wi_i)
        acc_i = acc_i + (xr_i * wi_i + xi_i * wr_i)
        return acc_r, acc_i

    zeros = jnp.zeros(acc_shape, jnp.float32)
    acc_r, acc_i = lax.fori_loop(0, cin, body, (zeros, zeros), unroll=True)
    or_ref[...] = acc_r
    oi_ref[...] = acc_i


# ---------------------------------------------------------------------------
# Tile-size helpers.
# ---------------------------------------------------------------------------
def _pick_tile(dim, cap):
    """Largest tile <= cap dividing dim, a multiple of 8 (TPU second-minor
    constraint) -- falls back to the full dim (always legal)."""
    if dim <= cap:
        return dim
    start = cap - (cap % 8)
    for t in range(start, 0, -8):
        if dim % t == 0:
            return t
    return dim


def _pick_lane_tile(mp, cap=512):
    """Largest multiple of 128 <= cap dividing mp (mp is a multiple of 128)."""
    for t in range(min(cap, mp), 0, -128):
        if mp % t == 0:
            return t
    return 128


# ---------------------------------------------------------------------------
# Fused wrapper: does both einsum('bixy,ioxy->boxy') mode products (weights1
# and weights2 paths) in a single pallas_call.
# ---------------------------------------------------------------------------
def _spectral_mul_fused(x_lo, x_hi, w1, w2):
    """x_lo/x_hi: (B, Cin, M1, M2) complex64; w1/w2: (Cin, Cout, M1, M2).
    Returns (lo, hi), each (B, Cout, M1, M2) complex64."""
    B, Cin, M1, M2 = x_lo.shape
    Cout = w1.shape[1]
    M = M1 * M2
    Mtot = 2 * M                                   # lo + hi concatenated on lanes
    Mp = ((Mtot + 127) // 128) * 128               # lane-dense padding

    # Fuse the two paths along the lane axis; put Cin leading for x so the
    # in-kernel reduction indexes the leading ref axis.
    x_slab = jnp.concatenate(
        [x_lo.reshape(B, Cin, M), x_hi.reshape(B, Cin, M)], axis=-1)  # (B,Cin,2M)
    x_slab = jnp.transpose(x_slab, (1, 0, 2))                          # (Cin,B,2M)
    w_slab = jnp.concatenate(
        [w1.reshape(Cin, Cout, M), w2.reshape(Cin, Cout, M)], axis=-1)  # (Cin,Cout,2M)

    pad = Mp - Mtot
    if pad:
        x_slab = jnp.pad(x_slab, ((0, 0), (0, 0), (0, pad)))
        w_slab = jnp.pad(w_slab, ((0, 0), (0, 0), (0, pad)))

    xr = jnp.real(x_slab).astype(jnp.float32)
    xi = jnp.imag(x_slab).astype(jnp.float32)
    wr = jnp.real(w_slab).astype(jnp.float32)
    wi = jnp.imag(w_slab).astype(jnp.float32)

    # Tile sizes (largest tiles that keep VMEM bounded on v7x's 64 MiB).
    b_blk = _pick_tile(B, 8)
    o_blk = _pick_tile(Cout, 32)
    m_blk = _pick_lane_tile(Mp, 512)

    # Grid order: batch innermost so the weight tile (depends only on o, m) is
    # reused across consecutive steps without re-DMA.
    grid = (Mp // m_blk, Cout // o_blk, B // b_blk)

    x_spec = pl.BlockSpec((Cin, b_blk, m_blk), lambda m, o, b: (0, b, m))
    w_spec = pl.BlockSpec((Cin, o_blk, m_blk), lambda m, o, b: (0, o, m))
    o_spec = pl.BlockSpec((b_blk, o_blk, m_blk), lambda m, o, b: (b, o, m))

    out_r, out_i = pl.pallas_call(
        _spectral_mul_kernel,
        grid=grid,
        in_specs=[x_spec, x_spec, w_spec, w_spec],
        out_specs=[o_spec, o_spec],
        out_shape=[
            jax.ShapeDtypeStruct((B, Cout, Mp), jnp.float32),
            jax.ShapeDtypeStruct((B, Cout, Mp), jnp.float32),
        ],
        compiler_params=pltpu.CompilerParams(
            dimension_semantics=("parallel", "parallel", "parallel"),
            vmem_limit_bytes=48 * 1024 * 1024,
        ),
    )(xr, xi, wr, wi)

    out = lax.complex(out_r, out_i)                # (B, Cout, Mp) complex64
    lo = out[..., :M].reshape(B, Cout, M1, M2)
    hi = out[..., M:Mtot].reshape(B, Cout, M1, M2)
    return lo, hi


# ---------------------------------------------------------------------------
# Module
# ---------------------------------------------------------------------------
class SpectralConv2d:
    """JAX port of the PyTorch SpectralConv2d module (forward pass)."""

    def __init__(self, in_channels, out_channels, modes1, modes2, key):
        self.in_channels = in_channels
        self.out_channels = out_channels
        self.modes1 = modes1
        self.modes2 = modes2
        scale = 1.0 / (in_channels * out_channels)
        k1, k2, k3, k4 = jax.random.split(key, 4)
        shape = (in_channels, out_channels, modes1, modes2)
        # torch.rand(..., dtype=cfloat): uniform [0,1) real and imag parts.
        self.weights1 = scale * lax.complex(
            jax.random.uniform(k1, shape, jnp.float32),
            jax.random.uniform(k2, shape, jnp.float32))
        self.weights2 = scale * lax.complex(
            jax.random.uniform(k3, shape, jnp.float32),
            jax.random.uniform(k4, shape, jnp.float32))

    def __call__(self, x, exp_r, exp_i, nAmp_real, nAmp_imag,
                 nPhase_real, nphase_imag):
        # TODO(synk): the colored-noise subtraction (cn.powerlaw_psd_gaussian
        # driven by host numpy RNG + torch.median of the aux inputs) has no
        # deterministic JAX/Pallas equivalent and is omitted.
        B, Cin, H, W = x.shape
        M1, M2 = self.modes1, self.modes2
        Wc = W // 2 + 1
        Cout = self.out_channels

        # TODO(synk): rfft2/irfft2 have no Pallas TPU primitive; done in XLA.
        x_ft = jnp.fft.rfft2(x)                      # (B, Cin, H, Wc) complex64

        lo, hi = _spectral_mul_fused(
            x_ft[:, :, :M1, :M2], x_ft[:, :, H - M1:, :M2],
            self.weights1, self.weights2)

        # Assemble out_ft by pad + concat (no zeros-array + scatter round trip).
        if H >= 2 * M1:
            lo_p = jnp.pad(lo, ((0, 0), (0, 0), (0, 0), (0, Wc - M2)))
            hi_p = jnp.pad(hi, ((0, 0), (0, 0), (0, 0), (0, Wc - M2)))
            mid = jnp.zeros((B, Cout, H - 2 * M1, Wc), jnp.complex64)
            out_ft = jnp.concatenate([lo_p, mid, hi_p], axis=2)
        else:  # degenerate overlapping case: keep PyTorch overwrite semantics
            out_ft = jnp.zeros((B, Cout, H, Wc), jnp.complex64)
            out_ft = out_ft.at[:, :, :M1, :M2].set(lo)
            out_ft = out_ft.at[:, :, H - M1:, :M2].set(hi)

        return jnp.fft.irfft2(out_ft, s=(H, W))      # (B, Cout, H, W) float32


if __name__ == "__main__":
    key = jax.random.PRNGKey(0)
    k_x, k_w, k_aux = jax.random.split(key, 3)

    B, Cin, Cout, H, W = 2, 4, 4, 16, 16
    modes1, modes2 = 6, 6

    layer = SpectralConv2d(Cin, Cout, modes1, modes2, k_w)

    x = jax.random.normal(k_x, (B, Cin, H, W), jnp.float32)
    # Auxiliary noise-parameter inputs of the original signature (unused,
    # since the colored-noise term is omitted — see TODO above).
    aux = jax.random.normal(k_aux, (8,), jnp.float32)

    y = layer(x, aux, aux, aux, aux, aux, aux)
    y = jax.block_until_ready(y)
    assert y.shape == (B, Cout, H, W) and y.dtype == jnp.float32

    # --- correctness: Pallas contraction vs full-precision einsum reference ---
    x_ft = jnp.fft.rfft2(x)
    x_lo = x_ft[:, :, :modes1, :modes2]
    x_hi = x_ft[:, :, H - modes1:, :modes2]
    ref_lo = jnp.einsum("bixy,ioxy->boxy", x_lo, layer.weights1,
                        precision=lax.Precision.HIGHEST)
    ref_hi = jnp.einsum("bixy,ioxy->boxy", x_hi, layer.weights2,
                        precision=lax.Precision.HIGHEST)
    got_lo, got_hi = _spectral_mul_fused(x_lo, x_hi,
                                         layer.weights1, layer.weights2)
    assert jnp.allclose(jnp.real(ref_lo), jnp.real(got_lo), atol=1e-5)
    assert jnp.allclose(jnp.imag(ref_lo), jnp.imag(got_lo), atol=1e-5)
    assert jnp.allclose(jnp.real(ref_hi), jnp.real(got_hi), atol=1e-5)
    assert jnp.allclose(jnp.imag(ref_hi), jnp.imag(got_hi), atol=1e-5)

    # --- end-to-end check vs plain-JAX reference of the whole forward ---
    out_ft_ref = jnp.zeros((B, Cout, H, W // 2 + 1), jnp.complex64)
    out_ft_ref = out_ft_ref.at[:, :, :modes1, :modes2].set(ref_lo)
    out_ft_ref = out_ft_ref.at[:, :, H - modes1:, :modes2].set(ref_hi)
    y_ref = jnp.fft.irfft2(out_ft_ref, s=(H, W))
    assert jnp.allclose(y, y_ref, atol=1e-4)

    print("KERNEL_OK")
</pallas_src>

<mosaic_0001>
module attributes {stable_mosaic.version = 11 : i64} {
  func.func @_spectral_mul_kernel(%arg0: i32, %arg1: i32, %arg2: i32, %arg3: memref<4x2x128xf32, #tpu.memory_space<vmem>>, %arg4: memref<4x2x128xf32, #tpu.memory_space<vmem>>, %arg5: memref<4x4x128xf32, #tpu.memory_space<vmem>>, %arg6: memref<4x4x128xf32, #tpu.memory_space<vmem>>, %arg7: memref<2x4x128xf32, #tpu.memory_space<vmem>>, %arg8: memref<2x4x128xf32, #tpu.memory_space<vmem>>) attributes {dimension_semantics = [#tpu.dimension_semantics<parallel>, #tpu.dimension_semantics<parallel>, #tpu.dimension_semantics<parallel>], iteration_bounds = array<i64: 1, 1, 1>, scalar_prefetch = 0 : i64, scratch_operands = 0 : i64, tpu.core_type = #tpu.core_type<tc>, window_params = [{transform_indices = @transform_0, window_bounds = array<i64: 4, 2, 128>}, {transform_indices = @transform_1, window_bounds = array<i64: 4, 2, 128>}, {transform_indices = @transform_2, window_bounds = array<i64: 4, 4, 128>}, {transform_indices = @transform_3, window_bounds = array<i64: 4, 4, 128>}, {transform_indices = @transform_4, window_bounds = array<i64: 2, 4, 128>}, {transform_indices = @transform_5, window_bounds = array<i64: 2, 4, 128>}]} {
    %cst = arith.constant 0.000000e+00 : f32
    %0 = vector.broadcast %cst : f32 to vector<2x4x128xf32>
    %c0_i32 = arith.constant 0 : i32
    %1 = arith.index_cast %c0_i32 : i32 to index
    %c0 = arith.constant 0 : index
    %c0_0 = arith.constant 0 : index
    %2 = vector.load %arg3[%1, %c0, %c0_0] : memref<4x2x128xf32, #tpu.memory_space<vmem>>, vector<1x2x128xf32>
    %3 = vector.shape_cast %2 : vector<1x2x128xf32> to vector<2x128xf32>
    %4 = vector.shape_cast %3 : vector<2x128xf32> to vector<2x1x128xf32>
    %5 = arith.index_cast %c0_i32 : i32 to index
    %c0_1 = arith.constant 0 : index
    %c0_2 = arith.constant 0 : index
    %6 = vector.load %arg4[%5, %c0_1, %c0_2] : memref<4x2x128xf32, #tpu.memory_space<vmem>>, vector<1x2x128xf32>
    %7 = vector.shape_cast %6 : vector<1x2x128xf32> to vector<2x128xf32>
    %8 = vector.shape_cast %7 : vector<2x128xf32> to vector<2x1x128xf32>
    %9 = arith.index_cast %c0_i32 : i32 to index
    %c0_3 = arith.constant 0 : index
    %c0_4 = arith.constant 0 : index
    %10 = vector.load %arg5[%9, %c0_3, %c0_4] : memref<4x4x128xf32, #tpu.memory_space<vmem>>, vector<1x4x128xf32>
    %11 = vector.shape_cast %10 : vector<1x4x128xf32> to vector<4x128xf32>
    %12 = vector.shape_cast %11 : vector<4x128xf32> to vector<1x4x128xf32>
    %13 = arith.index_cast %c0_i32 : i32 to index
    %c0_5 = arith.constant 0 : index
    %c0_6 = arith.constant 0 : index
    %14 = vector.load %arg6[%13, %c0_5, %c0_6] : memref<4x4x128xf32, #tpu.memory_space<vmem>>, vector<1x4x128xf32>
    %15 = vector.shape_cast %14 : vector<1x4x128xf32> to vector<4x128xf32>
    %16 = vector.shape_cast %15 : vector<4x128xf32> to vector<1x4x128xf32>
    %17 = vector.broadcast %4 : vector<2x1x128xf32> to vector<2x4x128xf32>
    %18 = vector.broadcast %12 : vector<1x4x128xf32> to vector<2x4x128xf32>
    %19 = arith.mulf %17, %18 : vector<2x4x128xf32>
    %20 = vector.broadcast %8 : vector<2x1x128xf32> to vector<2x4x128xf32>
    %21 = vector.broadcast %16 : vector<1x4x128xf32> to vector<2x4x128xf32>
    %22 = arith.mulf %20, %21 : vector<2x4x128xf32>
    %23 = arith.subf %19, %22 : vector<2x4x128xf32>
    %24 = arith.addf %0, %23 : vector<2x4x128xf32>
    %25 = vector.broadcast %4 : vector<2x1x128xf32> to vector<2x4x128xf32>
    %26 = vector.broadcast %16 : vector<1x4x128xf32> to vector<2x4x128xf32>
    %27 = arith.mulf %25, %26 : vector<2x4x128xf32>
    %28 = vector.broadcast %8 : vector<2x1x128xf32> to vector<2x4x128xf32>
    %29 = vector.broadcast %12 : vector<1x4x128xf32> to vector<2x4x128xf32>
    %30 = arith.mulf %28, %29 : vector<2x4x128xf32>
    %31 = arith.addf %27, %30 : vector<2x4x128xf32>
    %32 = arith.addf %0, %31 : vector<2x4x128xf32>
    %c1_i32 = arith.constant 1 : i32
    %33 = arith.index_cast %c1_i32 : i32 to index
    %c0_7 = arith.constant 0 : index
    %c0_8 = arith.constant 0 : index
    %34 = vector.load %arg3[%33, %c0_7, %c0_8] : memref<4x2x128xf32, #tpu.memory_space<vmem>>, vector<1x2x128xf32>
    %35 = vector.shape_cast %34 : vector<1x2x128xf32> to vector<2x128xf32>
    %36 = vector.shape_cast %35 : vector<2x128xf32> to vector<2x1x128xf32>
    %37 = arith.index_cast %c1_i32 : i32 to index
    %c0_9 = arith.constant 0 : index
    %c0_10 = arith.constant 0 : index
    %38 = vector.load %arg4[%37, %c0_9, %c0_10] : memref<4x2x128xf32, #tpu.memory_space<vmem>>, vector<1x2x128xf32>
    %39 = vector.shape_cast %38 : vector<1x2x128xf32> to vector<2x128xf32>
    %40 = vector.shape_cast %39 : vector<2x128xf32> to vector<2x1x128xf32>
    %41 = arith.index_cast %c1_i32 : i32 to index
    %c0_11 = arith.constant 0 : index
    %c0_12 = arith.constant 0 : index
    %42 = vector.load %arg5[%41, %c0_11, %c0_12] : memref<4x4x128xf32, #tpu.memory_space<vmem>>, vector<1x4x128xf32>
    %43 = vector.shape_cast %42 : vector<1x4x128xf32> to vector<4x128xf32>
    %44 = vector.shape_cast %43 : vector<4x128xf32> to vector<1x4x128xf32>
    %45 = arith.index_cast %c1_i32 : i32 to index
    %c0_13 = arith.constant 0 : index
    %c0_14 = arith.constant 0 : index
    %46 = vector.load %arg6[%45, %c0_13, %c0_14] : memref<4x4x128xf32, #tpu.memory_space<vmem>>, vector<1x4x128xf32>
    %47 = vector.shape_cast %46 : vector<1x4x128xf32> to vector<4x128xf32>
    %48 = vector.shape_cast %47 : vector<4x128xf32> to vector<1x4x128xf32>
    %49 = vector.broadcast %36 : vector<2x1x128xf32> to vector<2x4x128xf32>
    %50 = vector.broadcast %44 : vector<1x4x128xf32> to vector<2x4x128xf32>
    %51 = arith.mulf %49, %50 : vector<2x4x128xf32>
    %52 = vector.broadcast %40 : vector<2x1x128xf32> to vector<2x4x128xf32>
    %53 = vector.broadcast %48 : vector<1x4x128xf32> to vector<2x4x128xf32>
    %54 = arith.mulf %52, %53 : vector<2x4x128xf32>
    %55 = arith.subf %51, %54 : vector<2x4x128xf32>
    %56 = arith.addf %24, %55 : vector<2x4x128xf32>
    %57 = vector.broadcast %36 : vector<2x1x128xf32> to vector<2x4x128xf32>
    %58 = vector.broadcast %48 : vector<1x4x128xf32> to vector<2x4x128xf32>
    %59 = arith.mulf %57, %58 : vector<2x4x128xf32>
    %60 = vector.broadcast %40 : vector<2x1x128xf32> to vector<2x4x128xf32>
    %61 = vector.broadcast %44 : vector<1x4x128xf32> to vector<2x4x128xf32>
    %62 = arith.mulf %60, %61 : vector<2x4x128xf32>
    %63 = arith.addf %59, %62 : vector<2x4x128xf32>
    %64 = arith.addf %32, %63 : vector<2x4x128xf32>
    %c2_i32 = arith.constant 2 : i32
    %65 = arith.index_cast %c2_i32 : i32 to index
    %c0_15 = arith.constant 0 : index
    %c0_16 = arith.constant 0 : index
    %66 = vector.load %arg3[%65, %c0_15, %c0_16] : memref<4x2x128xf32, #tpu.memory_space<vmem>>, vector<1x2x128xf32>
    %67 = vector.shape_cast %66 : vector<1x2x128xf32> to vector<2x128xf32>
    %68 = vector.shape_cast %67 : vector<2x128xf32> to vector<2x1x128xf32>
    %69 = arith.index_cast %c2_i32 : i32 to index
    %c0_17 = arith.constant 0 : index
    %c0_18 = arith.constant 0 : index
    %70 = vector.load %arg4[%69, %c0_17, %c0_18] : memref<4x2x128xf32, #tpu.memory_space<vmem>>, vector<1x2x128xf32>
    %71 = vector.shape_cast %70 : vector<1x2x128xf32> to vector<2x128xf32>
    %72 = vector.shape_cast %71 : vector<2x128xf32> to vector<2x1x128xf32>
    %73 = arith.index_cast %c2_i32 : i32 to index
    %c0_19 = arith.constant 0 : index
    %c0_20 = arith.constant 0 : index
    %74 = vector.load %arg5[%73, %c0_19, %c0_20] : memref<4x4x128xf32, #tpu.memory_space<vmem>>, vector<1x4x128xf32>
    %75 = vector.shape_cast %74 : vector<1x4x128xf32> to vector<4x128xf32>
    %76 = vector.shape_cast %75 : vector<4x128xf32> to vector<1x4x128xf32>
    %77 = arith.index_cast %c2_i32 : i32 to index
    %c0_21 = arith.constant 0 : index
    %c0_22 = arith.constant 0 : index
    %78 = vector.load %arg6[%77, %c0_21, %c0_22] : memref<4x4x128xf32, #tpu.memory_space<vmem>>, vector<1x4x128xf32>
    %79 = vector.shape_cast %78 : vector<1x4x128xf32> to vector<4x128xf32>
    %80 = vector.shape_cast %79 : vector<4x128xf32> to vector<1x4x128xf32>
    %81 = vector.broadcast %68 : vector<2x1x128xf32> to vector<2x4x128xf32>
    %82 = vector.broadcast %76 : vector<1x4x128xf32> to vector<2x4x128xf32>
    %83 = arith.mulf %81, %82 : vector<2x4x128xf32>
    %84 = vector.broadcast %72 : vector<2x1x128xf32> to vector<2x4x128xf32>
    %85 = vector.broadcast %80 : vector<1x4x128xf32> to vector<2x4x128xf32>
    %86 = arith.mulf %84, %85 : vector<2x4x128xf32>
    %87 = arith.subf %83, %86 : vector<2x4x128xf32>
    %88 = arith.addf %56, %87 : vector<2x4x128xf32>
    %89 = vector.broadcast %68 : vector<2x1x128xf32> to vector<2x4x128xf32>
    %90 = vector.broadcast %80 : vector<1x4x128xf32> to vector<2x4x128xf32>
    %91 = arith.mulf %89, %90 : vector<2x4x128xf32>
    %92 = vector.broadcast %72 : vector<2x1x128xf32> to vector<2x4x128xf32>
    %93 = vector.broadcast %76 : vector<1x4x128xf32> to vector<2x4x128xf32>
    %94 = arith.mulf %92, %93 : vector<2x4x128xf32>
    %95 = arith.addf %91, %94 : vector<2x4x128xf32>
    %96 = arith.addf %64, %95 : vector<2x4x128xf32>
    %c3_i32 = arith.constant 3 : i32
    %97 = arith.index_cast %c3_i32 : i32 to index
    %c0_23 = arith.constant 0 : index
    %c0_24 = arith.constant 0 : index
    %98 = vector.load %arg3[%97, %c0_23, %c0_24] : memref<4x2x128xf32, #tpu.memory_space<vmem>>, vector<1x2x128xf32>
    %99 = vector.shape_cast %98 : vector<1x2x128xf32> to vector<2x128xf32>
    %100 = vector.shape_cast %99 : vector<2x128xf32> to vector<2x1x128xf32>
    %101 = arith.index_cast %c3_i32 : i32 to index
    %c0_25 = arith.constant 0 : index
    %c0_26 = arith.constant 0 : index
    %102 = vector.load %arg4[%101, %c0_25, %c0_26] : memref<4x2x128xf32, #tpu.memory_space<vmem>>, vector<1x2x128xf32>
    %103 = vector.shape_cast %102 : vector<1x2x128xf32> to vector<2x128xf32>
    %104 = vector.shape_cast %103 : vector<2x128xf32> to vector<2x1x128xf32>
    %105 = arith.index_cast %c3_i32 : i32 to index
    %c0_27 = arith.constant 0 : index
    %c0_28 = arith.constant 0 : index
    %106 = vector.load %arg5[%105, %c0_27, %c0_28] : memref<4x4x128xf32, #tpu.memory_space<vmem>>, vector<1x4x128xf32>
    %107 = vector.shape_cast %106 : vector<1x4x128xf32> to vector<4x128xf32>
    %108 = vector.shape_cast %107 : vector<4x128xf32> to vector<1x4x128xf32>
    %109 = arith.index_cast %c3_i32 : i32 to index
    %c0_29 = arith.constant 0 : index
    %c0_30 = arith.constant 0 : index
    %110 = vector.load %arg6[%109, %c0_29, %c0_30] : memref<4x4x128xf32, #tpu.memory_space<vmem>>, vector<1x4x128xf32>
    %111 = vector.shape_cast %110 : vector<1x4x128xf32> to vector<4x128xf32>
    %112 = vector.shape_cast %111 : vector<4x128xf32> to vector<1x4x128xf32>
    %113 = vector.broadcast %100 : vector<2x1x128xf32> to vector<2x4x128xf32>
    %114 = vector.broadcast %108 : vector<1x4x128xf32> to vector<2x4x128xf32>
    %115 = arith.mulf %113, %114 : vector<2x4x128xf32>
    %116 = vector.broadcast %104 : vector<2x1x128xf32> to vector<2x4x128xf32>
    %117 = vector.broadcast %112 : vector<1x4x128xf32> to vector<2x4x128xf32>
    %118 = arith.mulf %116, %117 : vector<2x4x128xf32>
    %119 = arith.subf %115, %118 : vector<2x4x128xf32>
    %120 = arith.addf %88, %119 : vector<2x4x128xf32>
    %121 = vector.broadcast %100 : vector<2x1x128xf32> to vector<2x4x128xf32>
    %122 = vector.broadcast %112 : vector<1x4x128xf32> to vector<2x4x128xf32>
    %123 = arith.mulf %121, %122 : vector<2x4x128xf32>
    %124 = vector.broadcast %104 : vector<2x1x128xf32> to vector<2x4x128xf32>
    %125 = vector.broadcast %108 : vector<1x4x128xf32> to vector<2x4x128xf32>
    %126 = arith.mulf %124, %125 : vector<2x4x128xf32>
    %127 = arith.addf %123, %126 : vector<2x4x128xf32>
    %128 = arith.addf %96, %127 : vector<2x4x128xf32>
    %c4_i32 = arith.constant 4 : i32
    %c0_31 = arith.constant 0 : index
    %c0_32 = arith.constant 0 : index
    %c0_33 = arith.constant 0 : index
    %129 = vector.load %arg7[%c0_31, %c0_32, %c0_33] : memref<2x4x128xf32, #tpu.memory_space<vmem>>, vector<2x4x128xf32>
    tpu.vector_store %arg7[%c0_31, %c0_32, %c0_33], %120 {strides = array<i32>} : memref<2x4x128xf32, #tpu.memory_space<vmem>>, vector<2x4x128xf32>,
    %c0_34 = arith.constant 0 : index
    %c0_35 = arith.constant 0 : index
    %c0_36 = arith.constant 0 : index
    %130 = vector.load %arg8[%c0_34, %c0_35, %c0_36] : memref<2x4x128xf32, #tpu.memory_space<vmem>>, vector<2x4x128xf32>
    tpu.vector_store %arg8[%c0_34, %c0_35, %c0_36], %128 {strides = array<i32>} : memref<2x4x128xf32, #tpu.memory_space<vmem>>, vector<2x4x128xf32>,
    return
  }
  func.func @transform_0(%arg0: i32, %arg1: i32, %arg2: i32) -> (i32, i32, i32) {
    %c0_i32 = arith.constant 0 : i32
    %c0_i32_0 = arith.constant 0 : i32
    return %c0_i32, %arg2, %arg0 : i32, i32, i32
  }
  func.func @transform_1(%arg0: i32, %arg1: i32, %arg2: i32) -> (i32, i32, i32) {
    %c0_i32 = arith.constant 0 : i32
    %c0_i32_0 = arith.constant 0 : i32
    return %c0_i32, %arg2, %arg0 : i32, i32, i32
  }
  func.func @transform_2(%arg0: i32, %arg1: i32, %arg2: i32) -> (i32, i32, i32) {
    %c0_i32 = arith.constant 0 : i32
    %c0_i32_0 = arith.constant 0 : i32
    return %c0_i32, %arg1, %arg0 : i32, i32, i32
  }
  func.func @transform_3(%arg0: i32, %arg1: i32, %arg2: i32) -> (i32, i32, i32) {
    %c0_i32 = arith.constant 0 : i32
    %c0_i32_0 = arith.constant 0 : i32
    return %c0_i32, %arg1, %arg0 : i32, i32, i32
  }
  func.func @transform_4(%arg0: i32, %arg1: i32, %arg2: i32) -> (i32, i32, i32) {
    %c0_i32 = arith.constant 0 : i32
    return %arg2, %arg1, %arg0 : i32, i32, i32
  }
  func.func @transform_5(%arg0: i32, %arg1: i32, %arg2: i32) -> (i32, i32, i32) {
    %c0_i32 = arith.constant 0 : i32
    return %arg2, %arg1, %arg0 : i32, i32, i32
  }
}

</mosaic_0001>

<bundles_post_ra>
// kernel: tpu_custom_call.1
= control target key start
LH: loop header
LB: loop body
LE: loop exit
PB: predicated region body
PF: predicated region fallthrough
CT: control target
= control target key end

     0   :  { %11 = vsyncpa [#allocation3], 0  ;;  %s856_s0 = inlined_call_operand.hbm [shape: f32[4,2,128], index: 0, kind: input, shape index: {}]   ;;  %s857_s1 = inlined_call_operand.hbm [shape: f32[4,2,128], index: 1, kind: input, shape index: {}]   ;;  %s858_s2 = inlined_call_operand.hbm [shape: f32[4,4,128], index: 2, kind: input, shape index: {}]   ;;  %s859_s3 = inlined_call_operand.hbm [shape: f32[4,4,128], index: 3, kind: input, shape index: {}]   ;;  %s860_s4 = inlined_call_operand.hbm [shape: f32[2,4,128], index: 4, kind: output, shape index: {0}]   ;;  %s861_s5 = inlined_call_operand.hbm [shape: f32[2,4,128], index: 5, kind: output, shape index: {1}]  }
   0x1   :  { %12 = vsyncpa [#allocation6], 0 }
   0x2   :  { %13 = vsyncpa [#allocation9], 0 }
   0x3   :  { %14 = vsyncpa [#allocation4], 0 }
   0x4   :  { %15 = vsyncpa [#allocation12], 0  ;;  %s632_s18 = smov [#allocation5]   ;;  %s633_s20 = smov [#allocation2]  }
   0x5   :  { %s33_s19 = sshll.u32 %s632_s18, 4  ;;  %s21_s21 = sshll.u32 %s633_s20, 4  ;;  %s34_s19 = int_to_ptr.vmem [resolvable:$true] %s33_s19  ;;  %s673_s21 = int_to_ptr.vmem [resolvable:$true] %s21_s21 }
   0x6   :  { %s490_s24 = scalar_lea.hbm %s857_s1, 128 }
   0x7   :  { %p491_p0 = scmp.ne.s32.totalorder %s857_s1, %s490_s24  ;;  %p494_p1 = scmp.lt.u32.totalorder %s490_s24, %s857_s1 }
   0x9   :  { %p496_p2 = pnand %p494_p1, %p491_p0 }
   0xb   :  { %499 = shalt.err (!%p496_p2)
}
   0xc   :  { %s500_s29 = scalar_lea.vmem %s34_s19, 128  ;;  %p505_p4 = scmp.lt.s32.totalorder %s34_s19, %s34_s19 }
   0xd   :  { %p501_p3 = scmp.ne.s32.totalorder %s34_s19, %s500_s29  ;;  %p506_p5 = scmp.lt.s32.totalorder %s500_s29, %s500_s29 }
   0xf   :  { %p507_p6 = por %p506_p5, %p505_p4 }
  0x11   :  { %p508_p7 = pnand %p507_p6, %p501_p3 }
  0x13   :  { %511 = shalt.err (!%p508_p7)
}
  0x14   :  { %s634_s30 = smov 32   ;;  %s635_s6 = smov 2  }
  0x15   :  { %39 = dma.hbm_to_vmem [thread:$0]  %s857_s1, 128, %s34_s19, [#allocation6], %s634_s30, %s634_s30, %s635_s6  }
  0x16   :  { %s512_s11 = scalar_lea.hbm %s856_s0, 128 }
  0x17   :  { %p513_p8 = scmp.ne.s32.totalorder %s856_s0, %s512_s11  ;;  %p516_p9 = scmp.lt.u32.totalorder %s512_s11, %s856_s0 }
  0x19   :  { %p518_p10 = pnand %p516_p9, %p513_p8 }
  0x1b   :  { %521 = shalt.err (!%p518_p10)
}
  0x1c   :  { %s522_s16 = scalar_lea.vmem %s673_s21, 128  ;;  %p527_p12 = scmp.lt.s32.totalorder %s673_s21, %s673_s21 }
  0x1d   :  { %p523_p11 = scmp.ne.s32.totalorder %s673_s21, %s522_s16  ;;  %p528_p13 = scmp.lt.s32.totalorder %s522_s16, %s522_s16 }
  0x1f   :  { %p529_p0 = por %p528_p13, %p527_p12 }
  0x21   :  { %p530_p1 = pnand %p529_p0, %p523_p11 }
  0x23   :  { %533 = shalt.err (!%p530_p1)
}
  0x24   :  { %27 = dma.hbm_to_vmem [thread:$0]  %s856_s0, 128, %s673_s21, [#allocation3], %s634_s30, %s634_s30, %s635_s6  }
  0x25   :  { %s636_s18 = smov [#allocation7]   ;;  %s534_s23 = scalar_lea.hbm %s858_s2, 256 }
  0x26   :  { %s45_s19 = sshll.u32 %s636_s18, 4  ;;  %p535_p2 = scmp.ne.s32.totalorder %s858_s2, %s534_s23  ;;  %s46_s19 = int_to_ptr.vmem [resolvable:$true] %s45_s19 }
  0x27   :  { %p538_p3 = scmp.lt.u32.totalorder %s534_s23, %s858_s2 }
  0x29   :  { %p540_p4 = pnand %p538_p3, %p535_p2 }
  0x2b   :  { %543 = shalt.err (!%p540_p4)
}
  0x2c   :  { %s544_s28 = scalar_lea.vmem %s46_s19, 256  ;;  %p549_p6 = scmp.lt.s32.totalorder %s46_s19, %s46_s19 }
  0x2d   :  { %p545_p5 = scmp.ne.s32.totalorder %s46_s19, %s544_s28  ;;  %p550_p7 = scmp.lt.s32.totalorder %s544_s28, %s544_s28 }
  0x2f   :  { %p551_p8 = por %p550_p7, %p549_p6 }
  0x31   :  { %p552_p9 = pnand %p551_p8, %p545_p5 }
  0x33   :  { %555 = shalt.err (!%p552_p9)
}
  0x34   :  { %s637_s0 = smov 64   ;;  %s638_s21 = smov 4  }
  0x35   :  { %51 = dma.hbm_to_vmem [thread:$0]  %s858_s2, 256, %s46_s19, [#allocation6], %s637_s0, %s637_s0, %s638_s21  }
  0x36   :  { %s639_s6 = smov [#allocation8]   ;;  %s556_s10 = scalar_lea.hbm %s859_s3, 256 }
  0x37   :  { %s57_s7 = sshll.u32 %s639_s6, 4  ;;  %p557_p10 = scmp.ne.s32.totalorder %s859_s3, %s556_s10  ;;  %s58_s7 = int_to_ptr.vmem [resolvable:$true] %s57_s7 }
  0x38   :  { %p560_p11 = scmp.lt.u32.totalorder %s556_s10, %s859_s3 }
  0x3a   :  { %p562_p12 = pnand %p560_p11, %p557_p10 }
  0x3c   :  { %565 = shalt.err (!%p562_p12)
}
  0x3d   :  { %s566_s15 = scalar_lea.vmem %s58_s7, 256  ;;  %p571_p0 = scmp.lt.s32.totalorder %s58_s7, %s58_s7 }
  0x3e   :  { %p567_p13 = scmp.ne.s32.totalorder %s58_s7, %s566_s15  ;;  %p572_p1 = scmp.lt.s32.totalorder %s566_s15, %s566_s15 }
  0x40   :  { %p573_p2 = por %p572_p1, %p571_p0 }
  0x42   :  { %p574_p3 = pnand %p573_p2, %p567_p13 }
  0x44   :  { %577 = shalt.err (!%p574_p3)
}
  0x45   :  { %63 = dma.hbm_to_vmem [thread:$0]  %s859_s3, 256, %s58_s7, [#allocation9], %s637_s0, %s637_s0, %s638_s21  }
  0x46   :  { %622 = dma.done.wait [#allocation3], 128  }
  0x47   :  { %623 = vsyncadd [#allocation3], 4294967168 }
  0x48   :  { %624 = dma.done.wait [#allocation6], 384  }
  0x49   :  { %625 = vsyncadd [#allocation6], 4294966912 }
  0x4a   :  { %626 = dma.done.wait [#allocation9], 256  }
  0x4b   :  { %627 = vsyncadd [#allocation9], 4294967040  ;;  %v89_v0 = vlaneseq  ;;  %v640_v1 = vmov 1966171168   ;;  %v740_v12 = vld [vmem:[#allocation7] sm:$0xf] }
  0x4c   :  { %v87_v2 = vunpack.c.l.s4 %v640_v1  ;;  %v471_v7 = vld.sshfl [vmem:[#allocation2] sm:$0x11 pattern:$0x75316420]  ;;  %v749_v23 = vld [vmem:[#allocation7 + $0x4] sm:$0xf] }
  0x4d   :  { %v90_v3 = vshrl.u32 %v89_v0, 7  ;;  %v472_v9 = vld.sshfl [vmem:[#allocation5] sm:$0x11 pattern:$0x75316420]  ;;  %v85_v10 = vcombine.high %v471_v7, %v471_v7  ;;  %s641_s3 = smov [#allocation10]  }
  0x4e   :  { %v88_v4 = vunpack.c.0.s8 %v87_v2  ;;  %v473_v13 = vld.sshfl [vmem:[#allocation2 + $0x2] sm:$0x11 pattern:$0x75316420]  ;;  %v109_v14 = vcombine.high %v472_v9, %v472_v9  ;;  %v753_v28 = vld [vmem:[#allocation8 + $0x4] sm:$0xf] }
  0x4f   :  { %v736_v6 = vsub.s32 0, %v90_v3  ;;  %v742_v15 = vld [vmem:[#allocation8] sm:$0xf]  ;;  %v172_v20 = vcombine.high %v473_v13, %v473_v13  ;;  %v763_v36 = vld [vmem:[#allocation7 + $0x8] sm:$0xf]  ;;  %s441_s1 = sshll.u32 %s641_s3, 4  ;;  %s442_s1 = int_to_ptr.vmem [resolvable:$true] %s441_s1 }
  0x50   :  { %v734_v5 = vsub.s32 %v88_v4, %v90_v3  ;;  %v474_v18 = vld.sshfl [vmem:[#allocation5 + $0x2] sm:$0x11 pattern:$0x75316420]  ;;  %v778_v49 = vld [vmem:[#allocation7 + $0xc] sm:$0xf]  ;;  %p583_p5 = scmp.lt.s32.totalorder %s442_s1, %s442_s1 }
  0x51   :  { %v475_v24 = vld.sshfl [vmem:[#allocation2 + $0x4] sm:$0x11 pattern:$0x75316420]  ;;  %v197_v26 = vcombine.high %v474_v18, %v474_v18  ;;  %v769_v40 = vld [vmem:[#allocation8 + $0x8] sm:$0xf] }
  0x52   :  { %v92_v8 = vrot.slane %v471_v7, %v734_v5  ;;  %v116_v11 = vrot.slane %v472_v9, %v734_v5  ;;  %v179_v17 = vrot.slane %v473_v13, %v734_v5  ;;  %v99_v19 = vrot.slane %v85_v10, %v734_v5  ;;  %v476_v31 = vld.sshfl [vmem:[#allocation5 + $0x4] sm:$0x11 pattern:$0x75316420]  ;;  %s642_s17 = smov [#allocation11]   ;;  %s578_s19 = scalar_lea.vmem %s442_s1, 128 }
  0x53   :  { %v204_v22 = vrot.slane %v474_v18, %v734_v5  ;;  %v123_v25 = vrot.slane %v109_v14, %v734_v5  ;;  %v269_v30 = vrot.slane %v475_v24, %v734_v5  ;;  %v294_v35 = vrot.slane %v476_v31, %v734_v5  ;;  %v477_v37 = vld.sshfl [vmem:[#allocation2 + $0x6] sm:$0x11 pattern:$0x75316420]  ;;  %v781_v51 = vld [vmem:[#allocation8 + $0xc] sm:$0xf]  ;;  %p579_p4 = scmp.ne.s32.totalorder %s442_s1, %s578_s19  ;;  %p584_p6 = scmp.lt.s32.totalorder %s578_s19, %s578_s19 }
  0x54   :  { %v129_v16 = vrot.slane %v92_v8, %v736_v6  ;;  %v141_v21 = vrot.slane %v116_v11, %v736_v6  ;;  %v219_v29 = vrot.slane %v179_v17, %v736_v6  ;;  %v758_v32 = vrot.slane %v99_v19, %v736_v6  ;;  %v478_v43 = vld.sshfl [vmem:[#allocation5 + $0x6] sm:$0x11 pattern:$0x75316420]  ;;  %s453_s18 = sshll.u32 %s642_s17, 4  ;;  %s454_s18 = int_to_ptr.vmem [resolvable:$true] %s453_s18 }
  0x55   :  { %v231_v34 = vrot.slane %v204_v22, %v736_v6  ;;  %v766_v38 = vrot.slane %v123_v25, %v736_v6  ;;  %v309_v41 = vrot.slane %v269_v30, %v736_v6  ;;  %v359_v42 = vrot.slane %v477_v37, %v734_v5  ;;  %p585_p7 = por %p584_p6, %p583_p5 }
  0x56   :  { %v136_v27 = vmul.f32 %v129_v16, %v740_v12  ;;  %v148_v33 = vmul.f32 %v141_v21, %v742_v15  ;;  %v226_v39 = vmul.f32 %v219_v29, %v749_v23  ;;  %v137_v44 = vmul.f32 %v758_v32, %v740_v12 }
  0x57   :  { %v238_v46 = vmul.f32 %v231_v34, %v753_v28  ;;  %v321_v47 = vrot.slane %v294_v35, %v736_v6  ;;  %v384_v48 = vrot.slane %v478_v43, %v734_v5  ;;  %v316_v50 = vmul.f32 %v309_v41, %v763_v36  ;;  %p586_p8 = pnand %p585_p7, %p579_p4 }
  0x58   :  { %v150_v45 = vsub.f32 %v136_v27, %v148_v33  ;;  %v399_v52 = vrot.slane %v359_v42, %v736_v6  ;;  %v149_v53 = vmul.f32 %v766_v38, %v742_v15  ;;  %v186_v54 = vrot.slane %v172_v20, %v734_v5 }
  0x59   :  { %v240_v55 = vsub.f32 %v226_v39, %v238_v46  ;;  %v328_v56 = vmul.f32 %v321_v47, %v769_v40  ;;  %v411_v57 = vrot.slane %v384_v48, %v736_v6  ;;  %v211_v58 = vrot.slane %v197_v26, %v734_v5 }
  0x5a   :  { %v406_v59 = vmul.f32 %v399_v52, %v778_v49  ;;  %v151_v60 = vsub.f32 %v137_v44, %v149_v53  ;;  %v223_v61 = vrot.slane %v186_v54, %v736_v6  ;;  %v262_v62 = vcombine.high %v475_v24, %v475_v24 }
  0x5b   :  { %v242_v63 = vadd.f32 %v240_v55, %v150_v45  ;;  %v330_v0 = vsub.f32 %v316_v50, %v328_v56  ;;  %v418_v1 = vmul.f32 %v411_v57, %v781_v51  ;;  %v235_v2 = vrot.slane %v211_v58, %v736_v6 }
  0x5c   :  { %v227_v3 = vmul.f32 %v223_v61, %v749_v23  ;;  %v276_v4 = vrot.slane %v262_v62, %v734_v5  ;;  %v287_v7 = vcombine.high %v476_v31, %v476_v31  ;;  %v352_v8 = vcombine.high %v477_v37, %v477_v37 }
  0x5d   :  { %v332_v9 = vadd.f32 %v330_v0, %v242_v63  ;;  %v420_v10 = vsub.f32 %v406_v59, %v418_v1  ;;  %v239_v11 = vmul.f32 %v235_v2, %v753_v28  ;;  %v377_v13 = vcombine.high %v478_v43, %v478_v43 }
  0x5e   :  { %v301_v14 = vrot.slane %v287_v7, %v734_v5  ;;  %v313_v17 = vrot.slane %v276_v4, %v736_v6  ;;  %v366_v18 = vrot.slane %v352_v8, %v734_v5  ;;  %v154_v19 = vmul.f32 %v129_v16, %v742_v15 }
  0x5f   :  { %v422_v20 = vadd.f32 %v420_v10, %v332_v9  ;;  %v241_v22 = vsub.f32 %v227_v3, %v239_v11  ;;  %v391_v24 = vrot.slane %v377_v13, %v734_v5  ;;  %v156_v25 = vmul.f32 %v141_v21, %v740_v12 }
  0x60   :  { %v317_v26 = vmul.f32 %v313_v17, %v763_v36  ;;  %v325_v27 = vrot.slane %v301_v14, %v736_v6  ;;  %v403_v30 = vrot.slane %v366_v18, %v736_v6  ;;  %v244_v31 = vmul.f32 %v219_v29, %v753_v28 }
  0x61   :  { %432 = vst [vmem:[#allocation10] sm:$0xf] %v422_v20  ;;  %v243_v33 = vadd.f32 %v241_v22, %v151_v60  ;;  %v415_v35 = vrot.slane %v391_v24, %v736_v6  ;;  %v158_v37 = vadd.f32 %v156_v25, %v154_v19  ;;  %v246_v16 = vmul.f32 %v231_v34, %v749_v23 }
  0x62   :  { %v329_v39 = vmul.f32 %v325_v27, %v769_v40  ;;  %v407_v5 = vmul.f32 %v403_v30, %v778_v49  ;;  %v334_v21 = vmul.f32 %v309_v41, %v769_v40  ;;  %v336_v42 = vmul.f32 %v321_v47, %v763_v36 }
  0x63   :  { %v419_v43 = vmul.f32 %v415_v35, %v781_v51  ;;  %v248_v44 = vadd.f32 %v246_v16, %v244_v31  ;;  %v424_v29 = vmul.f32 %v399_v52, %v781_v51  ;;  %v426_v45 = vmul.f32 %v411_v57, %v778_v49 }
  0x64   :  { %v331_v46 = vsub.f32 %v317_v26, %v329_v39  ;;  %v338_v6 = vadd.f32 %v336_v42, %v334_v21  ;;  %v155_v34 = vmul.f32 %v758_v32, %v742_v15  ;;  %v157_v48 = vmul.f32 %v766_v38, %v740_v12 }
  0x65   :  { %v421_v50 = vsub.f32 %v407_v5, %v419_v43  ;;  %v250_v53 = vadd.f32 %v248_v44, %v158_v37  ;;  %v428_v41 = vadd.f32 %v426_v45, %v424_v29  ;;  %v245_v47 = vmul.f32 %v223_v61, %v753_v28 }
  0x66   :  { %v333_v54 = vadd.f32 %v331_v46, %v243_v33  ;;  %v159_v55 = vadd.f32 %v157_v48, %v155_v34  ;;  %v247_v52 = vmul.f32 %v235_v2, %v749_v23  ;;  %v335_v56 = vmul.f32 %v313_v17, %v769_v40 }
  0x67   :  { %v340_v57 = vadd.f32 %v338_v6, %v250_v53  ;;  %v337_v58 = vmul.f32 %v325_v27, %v763_v36  ;;  %v425_v15 = vmul.f32 %v403_v30, %v781_v51  ;;  %v427_v12 = vmul.f32 %v415_v35, %v778_v49 }
  0x68   :  { %v423_v32 = vadd.f32 %v421_v50, %v333_v54  ;;  %v249_v38 = vadd.f32 %v247_v52, %v245_v47 }
  0x69   :  { %v430_v59 = vadd.f32 %v428_v41, %v340_v57  ;;  %v339_v28 = vadd.f32 %v337_v58, %v335_v56  ;;  %v429_v61 = vadd.f32 %v427_v12, %v425_v15 }
  0x6a   :  { %433 = vst [vmem:[#allocation10 + $0x4] sm:$0xf] %v423_v32  ;;  %v251_v60 = vadd.f32 %v249_v38, %v159_v55 }
  0x6b   :  { %434 = vst [vmem:[#allocation11] sm:$0xf] %v430_v59 }
  0x6c   :  { %589 = shalt.err (!%p586_p8)
}
  0x6d   :  { %s590_s23 = scalar_lea.hbm %s860_s4, 128 }
  0x6e   :  { %p591_p9 = scmp.ne.s32.totalorder %s860_s4, %s590_s23  ;;  %p594_p10 = scmp.lt.u32.totalorder %s590_s23, %s860_s4 }
  0x70   :  { %p596_p11 = pnand %p594_p10, %p591_p9 }
  0x72   :  { %599 = shalt.err (!%p596_p11)
}
  0x73   :  { %447 = dma.vmem_to_hbm [thread:$0]  %s442_s1, 128, %s860_s4, [#allocation4], %s637_s0, %s637_s0, %s638_s21   ;;  %v341_v23 = vadd.f32 %v339_v28, %v251_v60 }
  0x74   :  { %s600_s30 = scalar_lea.vmem %s454_s18, 128  ;;  %p605_p13 = scmp.lt.s32.totalorder %s454_s18, %s454_s18 }
  0x75   :  { %v431_v36 = vadd.f32 %v429_v61, %v341_v23  ;;  %p601_p12 = scmp.ne.s32.totalorder %s454_s18, %s600_s30  ;;  %p606_p0 = scmp.lt.s32.totalorder %s600_s30, %s600_s30 }
  0x77   :  { %435 = vst [vmem:[#allocation11 + $0x4] sm:$0xf] %v431_v36  ;;  %p607_p1 = por %p606_p0, %p605_p13 }
  0x79   :  { %p608_p2 = pnand %p607_p1, %p601_p12 }
  0x7b   :  { %611 = shalt.err (!%p608_p2)
}
  0x7c   :  { %s612_s8 = scalar_lea.hbm %s861_s5, 128 }
  0x7d   :  { %p613_p3 = scmp.ne.s32.totalorder %s861_s5, %s612_s8  ;;  %p616_p4 = scmp.lt.u32.totalorder %s612_s8, %s861_s5 }
  0x7f   :  { %p618_p5 = pnand %p616_p4, %p613_p3 }
  0x81   :  { %621 = shalt.err (!%p618_p5)
}
  0x82   :  { %459 = dma.vmem_to_hbm [thread:$0]  %s454_s18, 128, %s861_s5, [#allocation12], %s637_s0, %s637_s0, %s638_s21  }
  0x83   :  { %628 = dma.done.wait [#allocation4], 128  }
  0x84   :  { %629 = vsyncadd [#allocation4], 4294967168 }
  0x85   :  { %630 = dma.done.wait [#allocation12], 128  }
  0x86   :  { %631 = vsyncadd [#allocation12], 4294967168 }
  0x87   :  { %466 = vsyncpa [#allocation3], 1 }
  0x88   :  { %467 = vsyncpa [#allocation6], 1 }
  0x89   :  { %468 = vsyncpa [#allocation9], 1 }
  0x8a   :  { %469 = vsyncpa [#allocation4], 1 }
  0x8b   :  { %470 = vsyncpa [#allocation12], 1 }

</bundles_post_ra>
